<compile_context>
chip_gen: v6e
topology: v6e:2x2x1
jax: 0.10.0
libtpu: 0.0.40
codegen_flags: <defaults>
</compile_context>

<pallas_src>
import functools

import jax
import jax.numpy as jnp
from jax.experimental import pallas as pl
from jax.experimental.pallas import tpu as pltpu


def _round_up(x, m):
    return ((x + m - 1) // m) * m


def _vmem():
    return pl.BlockSpec(memory_space=pltpu.MemorySpace.VMEM)


def _smem():
    return pl.BlockSpec(memory_space=pltpu.MemorySpace.SMEM)


# ----------------------------------------------------------------------------
# Single fused kernel: embeddings -> convs -> max-pool -> similarity -> sigmoid
# ----------------------------------------------------------------------------
def _fused_dbr_cnn_kernel(tok_ref, emb_ref, w_ref, b_ref, mask_ref, cat_ref,
                          cls_w_ref, cls_b_ref, o_ref, x_scr,
                          *, batch, seq_len, s_pad, vocab, emb_dim, k_max,
                          f_pad):
    two_b = 2 * batch
    n_tok = two_b * s_pad

    # ---- 1) Embedding lookup fused in-kernel as a one-hot MXU matmul -------
    tok = tok_ref[...]                                          # (2B*S_pad, 1) i32
    lane_ids = jax.lax.broadcasted_iota(jnp.int32, (n_tok, vocab), 1)
    onehot = (lane_ids == tok).astype(jnp.float32)              # (2B*S_pad, V)
    x = jnp.dot(onehot, emb_ref[...], preferred_element_type=jnp.float32)
    x_scr[...] = x.reshape(two_b, s_pad, emb_dim)               # (2B, S_pad, E)

    # ---- 2) All conv branches (all window sizes, q & c) in one sweep -------
    # conv == accumulation of k_max shifted (2B*S, E) @ (E, F_pad) matmuls.
    # Shorter windows have zero rows in w_ref, so extra shifts contribute 0.
    acc = jnp.zeros((two_b * seq_len, f_pad), jnp.float32)
    for i in range(k_max):                                      # k_max is tiny/static
        xi = x_scr[:, i:i + seq_len, :].reshape(two_b * seq_len, emb_dim)
        acc = acc + jnp.dot(xi, w_ref[i], preferred_element_type=jnp.float32)
    h = jnp.tanh(acc + b_ref[...])                              # (2B*S, F_pad)
    h = h.reshape(two_b, seq_len, f_pad)
    # Mask positions past each window's valid conv length (tanh is in [-1,1],
    # so -1.0 is a safe fill for the max).  Zero-padded filter lanes stay
    # fully valid and pool to exactly 0.
    h = jnp.where(mask_ref[...] != 0.0, h, -1.0)
    enc = jnp.max(h, axis=1)                                    # (2B, F_pad)

    q = enc[:batch]                                             # (B, F_pad)
    c = enc[batch:]                                             # (B, F_pad)

    # ---- 3) Similarity head -------------------------------------------------
    dot = jnp.sum(q * c, axis=1, keepdims=True)
    qsq = jnp.sum(q * q, axis=1, keepdims=True)
    csq = jnp.sum(c * c, axis=1, keepdims=True)
    eps2 = jnp.float32(1e-16)                                   # eps = 1e-8 on norms
    cos = (dot * jax.lax.rsqrt(jnp.maximum(qsq, eps2))
               * jax.lax.rsqrt(jnp.maximum(csq, eps2)))         # (B, 1)

    cat = cat_ref[...]                                          # (B, 8) f32 packed
    diff_comp = (cat[:, 0:1] == cat[:, 3:4]).astype(jnp.float32)
    diff_prio = pl.reciprocal(1.0 + jnp.abs(cat[:, 1:2] - cat[:, 4:5]),
                              approx=True)
    diff_time = pl.reciprocal(1.0 + jnp.abs(cat[:, 2:3] - cat[:, 5:6]),
                              approx=True)

    # Linear(4, 1): feature concat expressed as a scalar-weighted sum;
    # weights/bias are SMEM scalars (no tiny VMEM operands / lane slicing).
    logits = (diff_comp * cls_w_ref[0] + diff_prio * cls_w_ref[1]
              + diff_time * cls_w_ref[2] + cos * cls_w_ref[3] + cls_b_ref[0])
    o_ref[...] = jax.nn.sigmoid(logits)


# ----------------------------------------------------------------------------
# DBR_CNN module (JAX/Pallas)
# ----------------------------------------------------------------------------
class DBRCNN:
    def __init__(self, word_embedding, window_sizes, n_filters, key):
        self.word_embedding = jnp.asarray(word_embedding, jnp.float32)
        self.window_sizes = tuple(window_sizes)
        self.n_filters = int(n_filters)
        self.vocab, self.emb_dim = self.word_embedding.shape
        self.k_max = max(self.window_sizes)
        n_win = len(self.window_sizes)
        self.n_feat = self.n_filters * n_win
        # Lane-dense merged filter dimension (multiple of 128).
        self.f_pad = _round_up(max(self.n_feat, 128), 128)

        keys = jax.random.split(key, 2 * n_win + 2)
        w_merged = jnp.zeros((self.k_max, self.emb_dim, self.f_pad), jnp.float32)
        b_merged = jnp.zeros((1, self.f_pad), jnp.float32)
        for g, k in enumerate(self.window_sizes):
            fan_in = k * self.emb_dim
            bound = 1.0 / (fan_in ** 0.5)
            # Conv2d(1, n_filters, (k, emb)) weight, laid out as (k, E, F).
            w = jax.random.uniform(keys[2 * g], (k, self.emb_dim, self.n_filters),
                                   jnp.float32, -bound, bound)
            b = jax.random.uniform(keys[2 * g + 1], (self.n_filters,),
                                   jnp.float32, -bound, bound)
            c0 = g * self.n_filters
            w_merged = w_merged.at[:k, :, c0:c0 + self.n_filters].set(w)
            b_merged = b_merged.at[0, c0:c0 + self.n_filters].set(b)
        self.conv_w = w_merged
        self.conv_b = b_merged

        # nn.Linear(4, 1) parameters (kept as flat SMEM-friendly vectors).
        bound = 1.0 / (4 ** 0.5)
        self.cls_w = jax.random.uniform(keys[-2], (4,), jnp.float32, -bound, bound)
        self.cls_b = jax.random.uniform(keys[-1], (1,), jnp.float32, -bound, bound)

    def _valid_mask(self, seq_len):
        # (1, S, F_pad): 1.0 where conv position t is valid for that filter's
        # window size; padded filter lanes stay fully valid (they pool to 0).
        mask = jnp.ones((1, seq_len, self.f_pad), jnp.float32)
        for g, k in enumerate(self.window_sizes):
            c0 = g * self.n_filters
            mask = mask.at[0, seq_len - k + 1:, c0:c0 + self.n_filters].set(0.0)
        return mask

    def forward(self, query, candidate):
        (q_comp, q_prio, q_time), (q_tokens,) = query
        (c_comp, c_prio, c_time), (c_tokens,) = candidate
        batch, seq_len = q_tokens.shape
        s_pad = _round_up(seq_len + self.k_max - 1, 8)

        # Tiny XLA-side glue: pack token ids (query & candidate stacked along
        # batch, time-padded; pad positions are masked in-kernel) and pack the
        # six categorical (B,1) operands into one (B,8) array.
        tokens = jnp.concatenate([q_tokens, c_tokens], axis=0).astype(jnp.int32)
        tokens = jnp.pad(tokens, ((0, 0), (0, s_pad - seq_len)))
        tokens = tokens.reshape(2 * batch * s_pad, 1)

        cat = jnp.concatenate(
            [q_comp.astype(jnp.float32), q_prio.astype(jnp.float32),
             q_time.astype(jnp.float32), c_comp.astype(jnp.float32),
             c_prio.astype(jnp.float32), c_time.astype(jnp.float32),
             jnp.zeros((batch, 2), jnp.float32)], axis=1)          # (B, 8)

        mask = self._valid_mask(seq_len)

        kernel = functools.partial(
            _fused_dbr_cnn_kernel, batch=batch, seq_len=seq_len, s_pad=s_pad,
            vocab=self.vocab, emb_dim=self.emb_dim, k_max=self.k_max,
            f_pad=self.f_pad)

        # TODO(synk): for large batch on v7x, add a batch grid with
        # dimension_semantics=("parallel",) and BlockSpec batch blocking so the
        # 2 TensorCores / 64 MiB VMEM are used; unnecessary at these shapes.
        return pl.pallas_call(
            kernel,
            out_shape=jax.ShapeDtypeStruct((batch, 1), jnp.float32),
            in_specs=[_vmem(),   # tokens (2B*S_pad, 1) i32
                      _vmem(),   # embedding table (V, E)
                      _vmem(),   # merged conv weight (K_max, E, F_pad)
                      _vmem(),   # merged conv bias (1, F_pad)
                      _vmem(),   # validity mask (1, S, F_pad)
                      _vmem(),   # packed categorical features (B, 8)
                      _smem(),   # classifier weight (4,)
                      _smem()],  # classifier bias (1,)
            out_specs=_vmem(),
            scratch_shapes=[pltpu.VMEM((2 * batch, s_pad, self.emb_dim),
                                       jnp.float32)],
        )(tokens, self.word_embedding, self.conv_w, self.conv_b, mask, cat,
          self.cls_w, self.cls_b)


if __name__ == "__main__":
    key = jax.random.PRNGKey(0)
    k_emb, k_params, k_qt, k_ct, k_cat = jax.random.split(key, 5)

    vocab, emb_dim, seq_len, batch = 50, 32, 8, 2
    window_sizes, n_filters = (2, 3), 8

    word_embedding = jax.random.normal(k_emb, (vocab, emb_dim), jnp.float32)
    model = DBRCNN(word_embedding, window_sizes, n_filters, k_params)

    # Textual inputs: (batch, seq_len) word indexes.
    q_tokens = jax.random.randint(k_qt, (batch, seq_len), 0, vocab, jnp.int32)
    c_tokens = jax.random.randint(k_ct, (batch, seq_len), 0, vocab, jnp.int32)

    # Categorical inputs: (component, priority, create_time), each (batch, 1).
    kc1, kc2, kc3, kc4, kc5, kc6 = jax.random.split(k_cat, 6)
    q_component = jax.random.randint(kc1, (batch, 1), 0, 4, jnp.int32)
    c_component = jax.random.randint(kc2, (batch, 1), 0, 4, jnp.int32)
    q_priority = jax.random.uniform(kc3, (batch, 1), jnp.float32, 0.0, 5.0)
    c_priority = jax.random.uniform(kc4, (batch, 1), jnp.float32, 0.0, 5.0)
    q_create = jax.random.uniform(kc5, (batch, 1), jnp.float32, 0.0, 100.0)
    c_create = jax.random.uniform(kc6, (batch, 1), jnp.float32, 0.0, 100.0)

    query = ((q_component, q_priority, q_create), (q_tokens,))
    candidate = ((c_component, c_priority, c_create), (c_tokens,))

    out = model.forward(query, candidate)
    out = jax.block_until_ready(out)
    assert out.shape == (batch, 1) and out.dtype == jnp.float32
    assert bool(jnp.all(jnp.isfinite(out)))
    print("KERNEL_OK")
</pallas_src>

<mosaic_0001>
module attributes {stable_mosaic.version = 11 : i64} {
  func.func @_fused_dbr_cnn_kernel(%arg0: memref<64x1xi32, #tpu.memory_space<vmem>>, %arg1: memref<50x32xf32, #tpu.memory_space<vmem>>, %arg2: memref<3x32x128xf32, #tpu.memory_space<vmem>>, %arg3: memref<1x128xf32, #tpu.memory_space<vmem>>, %arg4: memref<1x8x128xf32, #tpu.memory_space<vmem>>, %arg5: memref<2x8xf32, #tpu.memory_space<vmem>>, %arg6: memref<4xf32, #tpu.memory_space<smem>>, %arg7: memref<1xf32, #tpu.memory_space<smem>>, %arg8: memref<2x1xf32, #tpu.memory_space<vmem>>, %arg9: memref<4x16x32xf32, #tpu.memory_space<vmem>>) attributes {dimension_semantics = [], scalar_prefetch = 0 : i64, scratch_operands = 1 : i64, tpu.core_type = #tpu.core_type<tc>} {
    %c0 = arith.constant 0 : index
    %c0_0 = arith.constant 0 : index
    %0 = vector.load %arg0[%c0, %c0_0] : memref<64x1xi32, #tpu.memory_space<vmem>>, vector<64x1xi32>
    %1 = tpu.iota {dimensions = array<i32: 1>} : vector<64x50xi32>
    %2 = vector.broadcast %0 : vector<64x1xi32> to vector<64x50xi32>
    %3 = arith.cmpi eq, %1, %2 : vector<64x50xi32>
    %4 = arith.extui %3 : vector<64x50xi1> to vector<64x50xi32>
    %5 = arith.sitofp %4 : vector<64x50xi32> to vector<64x50xf32>
    %c0_1 = arith.constant 0 : index
    %c0_2 = arith.constant 0 : index
    %6 = vector.load %arg1[%c0_1, %c0_2] : memref<50x32xf32, #tpu.memory_space<vmem>>, vector<50x32xf32>
    %cst = arith.constant dense<0.000000e+00> : vector<64x32xf32>
    %7 = tpu.matmul %5, %6, %cst {dimension_numbers = #tpu.dot_dimension_numbers<[1], [0], [0], [1], [0, 0, 1, 1], [], []>} : vector<64x50xf32>, vector<50x32xf32>, vector<64x32xf32> -> vector<64x32xf32>
    %8 = vector.shape_cast %7 : vector<64x32xf32> to vector<4x16x32xf32>
    %c0_3 = arith.constant 0 : index
    %c0_4 = arith.constant 0 : index
    %c0_5 = arith.constant 0 : index
    %9 = vector.load %arg9[%c0_3, %c0_4, %c0_5] : memref<4x16x32xf32, #tpu.memory_space<vmem>>, vector<4x16x32xf32>
    tpu.vector_store %arg9[%c0_3, %c0_4, %c0_5], %8 {strides = array<i32>} : memref<4x16x32xf32, #tpu.memory_space<vmem>>, vector<4x16x32xf32>,
    %cst_6 = arith.constant 0.000000e+00 : f32
    %10 = vector.broadcast %cst_6 : f32 to vector<32x128xf32>
    %c0_7 = arith.constant 0 : index
    %c0_8 = arith.constant 0 : index
    %c0_9 = arith.constant 0 : index
    %11 = vector.load %arg9[%c0_7, %c0_8, %c0_9] : memref<4x16x32xf32, #tpu.memory_space<vmem>>, vector<4x8x32xf32>
    %12 = vector.shape_cast %11 : vector<4x8x32xf32> to vector<32x32xf32>
    %c0_10 = arith.constant 0 : index
    %c0_11 = arith.constant 0 : index
    %c0_12 = arith.constant 0 : index
    %13 = vector.load %arg2[%c0_10, %c0_11, %c0_12] : memref<3x32x128xf32, #tpu.memory_space<vmem>>, vector<1x32x128xf32>
    %14 = vector.shape_cast %13 : vector<1x32x128xf32> to vector<32x128xf32>
    %cst_13 = arith.constant dense<0.000000e+00> : vector<32x128xf32>
    %15 = tpu.matmul %12, %14, %cst_13 {dimension_numbers = #tpu.dot_dimension_numbers<[1], [0], [0], [1], [0, 0, 1, 1], [], []>} : vector<32x32xf32>, vector<32x128xf32>, vector<32x128xf32> -> vector<32x128xf32>
    %16 = arith.addf %10, %15 : vector<32x128xf32>
    %c0_14 = arith.constant 0 : index
    %c1 = arith.constant 1 : index
    %c0_15 = arith.constant 0 : index
    %17 = vector.load %arg9[%c0_14, %c1, %c0_15] : memref<4x16x32xf32, #tpu.memory_space<vmem>>, vector<4x8x32xf32>
    %18 = vector.shape_cast %17 : vector<4x8x32xf32> to vector<32x32xf32>
    %c1_16 = arith.constant 1 : index
    %c0_17 = arith.constant 0 : index
    %c0_18 = arith.constant 0 : index
    %19 = vector.load %arg2[%c1_16, %c0_17, %c0_18] : memref<3x32x128xf32, #tpu.memory_space<vmem>>, vector<1x32x128xf32>
    %20 = vector.shape_cast %19 : vector<1x32x128xf32> to vector<32x128xf32>
    %cst_19 = arith.constant dense<0.000000e+00> : vector<32x128xf32>
    %21 = tpu.matmul %18, %20, %cst_19 {dimension_numbers = #tpu.dot_dimension_numbers<[1], [0], [0], [1], [0, 0, 1, 1], [], []>} : vector<32x32xf32>, vector<32x128xf32>, vector<32x128xf32> -> vector<32x128xf32>
    %22 = arith.addf %16, %21 : vector<32x128xf32>
    %c0_20 = arith.constant 0 : index
    %c2 = arith.constant 2 : index
    %c0_21 = arith.constant 0 : index
    %23 = vector.load %arg9[%c0_20, %c2, %c0_21] : memref<4x16x32xf32, #tpu.memory_space<vmem>>, vector<4x8x32xf32>
    %24 = vector.shape_cast %23 : vector<4x8x32xf32> to vector<32x32xf32>
    %c2_22 = arith.constant 2 : index
    %c0_23 = arith.constant 0 : index
    %c0_24 = arith.constant 0 : index
    %25 = vector.load %arg2[%c2_22, %c0_23, %c0_24] : memref<3x32x128xf32, #tpu.memory_space<vmem>>, vector<1x32x128xf32>
    %26 = vector.shape_cast %25 : vector<1x32x128xf32> to vector<32x128xf32>
    %cst_25 = arith.constant dense<0.000000e+00> : vector<32x128xf32>
    %27 = tpu.matmul %24, %26, %cst_25 {dimension_numbers = #tpu.dot_dimension_numbers<[1], [0], [0], [1], [0, 0, 1, 1], [], []>} : vector<32x32xf32>, vector<32x128xf32>, vector<32x128xf32> -> vector<32x128xf32>
    %28 = arith.addf %22, %27 : vector<32x128xf32>
    %c0_26 = arith.constant 0 : index
    %c0_27 = arith.constant 0 : index
    %29 = vector.load %arg3[%c0_26, %c0_27] : memref<1x128xf32, #tpu.memory_space<vmem>>, vector<1x128xf32>
    %30 = vector.broadcast %29 : vector<1x128xf32> to vector<32x128xf32>
    %31 = arith.addf %28, %30 : vector<32x128xf32>
    %32 = math.tanh %31 : vector<32x128xf32>
    %33 = vector.shape_cast %32 : vector<32x128xf32> to vector<4x8x128xf32>
    %c0_28 = arith.constant 0 : index
    %c0_29 = arith.constant 0 : index
    %c0_30 = arith.constant 0 : index
    %34 = vector.load %arg4[%c0_28, %c0_29, %c0_30] : memref<1x8x128xf32, #tpu.memory_space<vmem>>, vector<1x8x128xf32>
    %cst_31 = arith.constant 0.000000e+00 : f32
    %35 = vector.broadcast %cst_31 : f32 to vector<1x8x128xf32>
    %36 = arith.cmpf one, %34, %35 : vector<1x8x128xf32>
    %cst_32 = arith.constant -1.000000e+00 : f32
    %37 = vector.shape_cast %36 : vector<1x8x128xi1> to vector<1x8x128xi1>
    %38 = vector.broadcast %37 : vector<1x8x128xi1> to vector<4x8x128xi1>
    %39 = vector.broadcast %cst_32 : f32 to vector<4x8x128xf32>
    %40 = arith.select %38, %33, %39 : vector<4x8x128xi1>, vector<4x8x128xf32>
    %cst_33 = arith.constant dense<0xFF800000> : vector<4x128xf32>
    %41 = vector.multi_reduction <maximumf>, %40, %cst_33 [1] : vector<4x8x128xf32> to vector<4x128xf32>
    %42 = vector.extract_strided_slice %41 {offsets = [0, 0], sizes = [2, 128], strides = [1, 1]} : vector<4x128xf32> to vector<2x128xf32>
    %43 = vector.extract_strided_slice %41 {offsets = [2, 0], sizes = [2, 128], strides = [1, 1]} : vector<4x128xf32> to vector<2x128xf32>
    %44 = arith.mulf %42, %43 : vector<2x128xf32>
    %cst_34 = arith.constant dense<0.000000e+00> : vector<2xf32>
    %45 = vector.multi_reduction <add>, %44, %cst_34 [1] : vector<2x128xf32> to vector<2xf32>
    %46 = vector.shape_cast %45 : vector<2xf32> to vector<2x1xf32>
    %47 = arith.mulf %42, %42 : vector<2x128xf32>
    %cst_35 = arith.constant dense<0.000000e+00> : vector<2xf32>
    %48 = vector.multi_reduction <add>, %47, %cst_35 [1] : vector<2x128xf32> to vector<2xf32>
    %49 = vector.shape_cast %48 : vector<2xf32> to vector<2x1xf32>
    %50 = arith.mulf %43, %43 : vector<2x128xf32>
    %cst_36 = arith.constant dense<0.000000e+00> : vector<2xf32>
    %51 = vector.multi_reduction <add>, %50, %cst_36 [1] : vector<2x128xf32> to vector<2xf32>
    %52 = vector.shape_cast %51 : vector<2xf32> to vector<2x1xf32>
    %cst_37 = arith.constant 1.000000e-16 : f32
    %53 = vector.broadcast %cst_37 : f32 to vector<2x1xf32>
    %54 = arith.maximumf %49, %53 : vector<2x1xf32>
    %55 = math.rsqrt %54 : vector<2x1xf32>
    %56 = arith.mulf %46, %55 : vector<2x1xf32>
    %cst_38 = arith.constant 1.000000e-16 : f32
    %57 = vector.broadcast %cst_38 : f32 to vector<2x1xf32>
    %58 = arith.maximumf %52, %57 : vector<2x1xf32>
    %59 = math.rsqrt %58 : vector<2x1xf32>
    %60 = arith.mulf %56, %59 : vector<2x1xf32>
    %c0_39 = arith.constant 0 : index
    %c0_40 = arith.constant 0 : index
    %61 = vector.load %arg5[%c0_39, %c0_40] : memref<2x8xf32, #tpu.memory_space<vmem>>, vector<2x8xf32>
    %62 = vector.extract_strided_slice %61 {offsets = [0, 0], sizes = [2, 1], strides = [1, 1]} : vector<2x8xf32> to vector<2x1xf32>
    %63 = vector.extract_strided_slice %61 {offsets = [0, 3], sizes = [2, 1], strides = [1, 1]} : vector<2x8xf32> to vector<2x1xf32>
    %64 = arith.cmpf oeq, %62, %63 : vector<2x1xf32>
    %65 = arith.extui %64 : vector<2x1xi1> to vector<2x1xi32>
    %66 = arith.sitofp %65 : vector<2x1xi32> to vector<2x1xf32>
    %67 = vector.extract_strided_slice %61 {offsets = [0, 1], sizes = [2, 1], strides = [1, 1]} : vector<2x8xf32> to vector<2x1xf32>
    %68 = vector.extract_strided_slice %61 {offsets = [0, 4], sizes = [2, 1], strides = [1, 1]} : vector<2x8xf32> to vector<2x1xf32>
    %69 = arith.subf %67, %68 : vector<2x1xf32>
    %70 = math.absf %69 : vector<2x1xf32>
    %cst_41 = arith.constant 1.000000e+00 : f32
    %71 = vector.broadcast %cst_41 : f32 to vector<2x1xf32>
    %72 = arith.addf %71, %70 : vector<2x1xf32>
    %73 = tpu.reciprocal %72 {approx = true} : vector<2x1xf32> -> vector<2x1xf32>
    %74 = vector.extract_strided_slice %61 {offsets = [0, 2], sizes = [2, 1], strides = [1, 1]} : vector<2x8xf32> to vector<2x1xf32>
    %75 = vector.extract_strided_slice %61 {offsets = [0, 5], sizes = [2, 1], strides = [1, 1]} : vector<2x8xf32> to vector<2x1xf32>
    %76 = arith.subf %74, %75 : vector<2x1xf32>
    %77 = math.absf %76 : vector<2x1xf32>
    %cst_42 = arith.constant 1.000000e+00 : f32
    %78 = vector.broadcast %cst_42 : f32 to vector<2x1xf32>
    %79 = arith.addf %78, %77 : vector<2x1xf32>
    %80 = tpu.reciprocal %79 {approx = true} : vector<2x1xf32> -> vector<2x1xf32>
    %c0_43 = arith.constant 0 : index
    %81 = memref.load %arg6[%c0_43] : memref<4xf32, #tpu.memory_space<smem>>
    %82 = vector.broadcast %81 : f32 to vector<2x1xf32>
    %83 = arith.mulf %66, %82 : vector<2x1xf32>
    %c1_44 = arith.constant 1 : index
    %84 = memref.load %arg6[%c1_44] : memref<4xf32, #tpu.memory_space<smem>>
    %85 = vector.broadcast %84 : f32 to vector<2x1xf32>
    %86 = arith.mulf %73, %85 : vector<2x1xf32>
    %87 = arith.addf %83, %86 : vector<2x1xf32>
    %c2_45 = arith.constant 2 : index
    %88 = memref.load %arg6[%c2_45] : memref<4xf32, #tpu.memory_space<smem>>
    %89 = vector.broadcast %88 : f32 to vector<2x1xf32>
    %90 = arith.mulf %80, %89 : vector<2x1xf32>
    %91 = arith.addf %87, %90 : vector<2x1xf32>
    %c3 = arith.constant 3 : index
    %92 = memref.load %arg6[%c3] : memref<4xf32, #tpu.memory_space<smem>>
    %93 = vector.broadcast %92 : f32 to vector<2x1xf32>
    %94 = arith.mulf %60, %93 : vector<2x1xf32>
    %95 = arith.addf %91, %94 : vector<2x1xf32>
    %c0_46 = arith.constant 0 : index
    %96 = memref.load %arg7[%c0_46] : memref<1xf32, #tpu.memory_space<smem>>
    %97 = vector.broadcast %96 : f32 to vector<2x1xf32>
    %98 = arith.addf %95, %97 : vector<2x1xf32>
    %99 = arith.negf %98 : vector<2x1xf32>
    %100 = math.exp %99 : vector<2x1xf32>
    %cst_47 = arith.constant 1.000000e+00 : f32
    %101 = vector.broadcast %cst_47 : f32 to vector<2x1xf32>
    %102 = arith.addf %101, %100 : vector<2x1xf32>
    %103 = arith.divf %101, %102 : vector<2x1xf32>
    %c0_48 = arith.constant 0 : index
    %c0_49 = arith.constant 0 : index
    %104 = vector.load %arg8[%c0_48, %c0_49] : memref<2x1xf32, #tpu.memory_space<vmem>>, vector<2x1xf32>
    tpu.vector_store %arg8[%c0_48, %c0_49], %103 {strides = array<i32>} : memref<2x1xf32, #tpu.memory_space<vmem>>, vector<2x1xf32>,
    return
  }
}

</mosaic_0001>

<bundles_post_ra>
// kernel: tpu_custom_call.1
= control target key start
LH: loop header
LB: loop body
LE: loop exit
PB: predicated region body
PF: predicated region fallthrough
CT: control target
= control target key end

     0   :  { %14 = vsyncpa [#allocation5], 0  ;;  %s1102_s0 = inlined_call_operand.vmem [shape: s32[64,1], index: 0, kind: input, shape index: {}]   ;;  %s1103_s1 = inlined_call_operand.vmem [shape: f32[50,32], index: 1, kind: input, shape index: {}]   ;;  %s1104_s2 = inlined_call_operand.vmem [shape: f32[3,32,128], index: 2, kind: input, shape index: {}]   ;;  %s1105_s3 = inlined_call_operand.vmem [shape: f32[1,128], index: 3, kind: input, shape index: {}]   ;;  %s1106_s4 = inlined_call_operand.vmem [shape: f32[1,8,128], index: 4, kind: input, shape index: {}]   ;;  %s1107_s5 = inlined_call_operand.vmem [shape: f32[2,8], index: 5, kind: input, shape index: {}]   ;;  %s1108_s6 = inlined_call_operand.vmem [shape: f32[4], index: 6, kind: input, shape index: {}]   ;;  %s1109_s7 = inlined_call_operand.<no memory space> [shape: f32[1], index: 7, kind: input, shape index: {}]   ;;  %s1110_s8 = inlined_call_operand.vmem [shape: f32[2,1], index: 8, kind: output, shape index: {}]  }
   0x1   :  { %s33_s29 = sshll.u32 %s1108_s6, 4  ;;  %s34_s29 = int_to_ptr.vmem [resolvable:$true] %s33_s29 }
   0x2   :  { %s880_s30 = scalar_lea.vmem %s34_s29, 16  ;;  %p885_p1 = scmp.lt.s32.totalorder %s34_s29, %s34_s29 }
   0x3   :  { %p881_p0 = scmp.ne.s32.totalorder %s34_s29, %s880_s30  ;;  %p886_p2 = scmp.lt.s32.totalorder %s880_s30, %s880_s30 }
   0x5   :  { %p887_p3 = por %p886_p2, %p885_p1 }
   0x7   :  { %p888_p4 = pnand %p887_p3, %p881_p0 }
   0x9   :  { %891 = shalt.err (!%p888_p4)
}
   0xa   :  { %s894_s9 = smov [#allocation4]  }
   0xb   :  { %36 = dma.vmem_to_smem %s34_s29, 16, %s894_s9, [#allocation5]  }
   0xc   :  { %892 = dma.done.wait [#allocation5], 16  }
   0xd   :  { %893 = vsyncadd [#allocation5], 4294967280 }
   0xe   :  { %42 = sfence }
   0xf   :  { %v45_v0 = vld [vmem:[%s1102_s0 + $0x10] sm:$0xff]  ;;  %v43_v1 = vld [vmem:[%s1102_s0] sm:$0xff]  ;;  %vm133_vm0 = vcmask 1041408   ;;  %v895_v2 = vmov 0   ;;  %v46_v4 = vld [vmem:[%s1102_s0 + $0x18] sm:$0xff]  ;;  %v51_v16 = vlaneseq  ;;  %vm108_vm1 = vcmask 408576  }
  0x10   :  { %861 = vset.pattern.permute.xlu1 %v895_v2  ;;  %860 = vset.pattern.permute.xlu0 %v895_v2  ;;  %v107_v3 = vld [vmem:[%s1103_s1 + $0x30] sm:$0x3]  ;;  %v44_v5 = vld [vmem:[%s1102_s0 + $0x8] sm:$0xff]  ;;  %v105_v7 = vld [vmem:[%s1103_s1 + $0x20] sm:$0xff]  ;;  %v896_v20 = vmov 0.0   ;;  %s897_s26 = smov 125  }
  0x11   :  { %60 = vperm.xlu1 %861, %v45_v0   ;;  %54 = vperm.xlu0 %860, %v43_v1   ;;  %v106_v6 = vld [vmem:[%s1103_s1 + $0x28] sm:$0xff]  ;;  %v47_v9 = vld [vmem:[%s1102_s0 + $0x20] sm:$0xff]  ;;  %v104_v10 = vld [vmem:[%s1103_s1 + $0x18] sm:$0xff]  ;;  %v52_v17 = vand.u32 127, %v51_v16  ;;  %vm242_vm10 = vcmask 261120   ;;  %vm623_vm12 = vcmask 1041409  }
  0x12   :  { %786 = vmatprep.subr.msk.mxu0 %vm133_vm0, %v107_v3  ;;  %v48_v8 = vld [vmem:[%s1102_s0 + $0x28] sm:$0xff]  ;;  %v103_v11 = vld [vmem:[%s1103_s1 + $0x10] sm:$0xff]  ;;  %v50_v12 = vld [vmem:[%s1102_s0 + $0x38] sm:$0xff]  ;;  %s744_s17 = sld [smem:[#allocation4 + $0x2]]  ;;  %s898_s18 = smov 127   ;;  %vm697_vm14 = vcmask 1024  }
  0x13   :  { %787 = vmatpush3.msk.msra.mxu0 %vm133_vm0, %v107_v3  ;;  %v49_v13 = vld [vmem:[%s1102_s0 + $0x30] sm:$0xff]  ;;  %v102_v14 = vld [vmem:[%s1103_s1 + $0x8] sm:$0xff]  ;;  %v101_v15 = vld [vmem:[%s1103_s1] sm:$0xff]  ;;  %s899_s19 = smov 126   ;;  %s665_s20 = sld [smem:[#allocation4]] }
  0x14   :  { %788 = vmatprep.subr.mxu0 %v106_v6  ;;  %v724_v35 = vld [vmem:[%s1104_s2 + $0x38] sm:$0xff]  ;;  %v723_v36 = vld [vmem:[%s1104_s2 + $0x30] sm:$0xff]  ;;  %v722_v37 = vld [vmem:[%s1104_s2 + $0x28] sm:$0xff]  ;;  %s745_s21 = sld [smem:[#allocation4 + $0x3]] }
  0x15   :  { %63 = vperm.xlu1 %861, %v46_v4   ;;  %57 = vperm.xlu0 %860, %v44_v5   ;;  %v721_v38 = vld [vmem:[%s1104_s2 + $0x20] sm:$0xff]  ;;  %v258_v39 = vld [vmem:[%s1104_s2 + $0x18] sm:$0xff]  ;;  %v257_v51 = vld [vmem:[%s1104_s2 + $0x10] sm:$0xff] }
  0x16   :  { %789 = vmatpush3.msra.mxu0 %v106_v6  ;;  %812 = vmatprep.subr.mxu1 %v724_v35  ;;  %v1029_v40 = vld [vmem:[%s1107_s5] sm:$0x3]  ;;  %v256_v52 = vld [vmem:[%s1104_s2 + $0x8] sm:$0xff]  ;;  %v736_v55 = vld [vmem:[%s1104_s2 + $0x58] sm:$0xff] }
  0x17   :  { %790 = vmatprep.subr.mxu0 %v105_v7  ;;  %813 = vmatpush3.msra.mxu1 %v724_v35  ;;  %v255_v54 = vld [vmem:[%s1104_s2] sm:$0xff]  ;;  %v735_v59 = vld [vmem:[%s1104_s2 + $0x50] sm:$0xff]  ;;  %v734_v61 = vld [vmem:[%s1104_s2 + $0x48] sm:$0xff] }
  0x18   :  { %791 = vmatpush3.msra.mxu0 %v105_v7  ;;  %814 = vmatprep.subr.mxu1 %v723_v36  ;;  %v733_v63 = vld [vmem:[%s1104_s2 + $0x40] sm:$0xff] }
  0x19   :  { %69 = vperm.xlu1 %861, %v48_v8   ;;  %66 = vperm.xlu0 %860, %v47_v9  }
  0x1a   :  { %792 = vmatprep.subr.mxu0 %v104_v10  ;;  %815 = vmatpush3.msra.mxu1 %v723_v36 }
  0x1b   :  { %793 = vmatpush3.msra.mxu0 %v104_v10  ;;  %816 = vmatprep.subr.mxu1 %v722_v37 }
  0x1c   :  { %794 = vmatprep.subr.mxu0 %v103_v11  ;;  %817 = vmatpush3.msra.mxu1 %v722_v37 }
  0x1d   :  { %75 = vperm.xlu1 %861, %v50_v12   ;;  %72 = vperm.xlu0 %860, %v49_v13  }
  0x1e   :  { %795 = vmatpush3.msra.mxu0 %v103_v11  ;;  %818 = vmatprep.subr.mxu1 %v721_v38 }
  0x1f   :  { %796 = vmatprep.subr.mxu0 %v102_v14  ;;  %819 = vmatpush3.msra.mxu1 %v721_v38 }
  0x20   :  { %797 = vmatpush3.msra.mxu0 %v102_v14  ;;  %826 = vmatprep.subr.mxu1 %v258_v39  ;;  %v741_v14 = vld [vmem:[%s1105_s3] ss:$0 sm:$0xff] }
  0x21   :  { %798 = vmatprep.subr.mxu0 %v101_v15  ;;  %655 = vrot.lane.b32.xlu0 %v1029_v40, %s897_s26 }
  0x22   :  { %799 = vmatpush3.msra.mxu0 %v101_v15 }
  0x8c   :  { %v61_v18 = vpop.permute.xlu1 %60  ;;  %v55_v19 = vpop.permute.xlu0 %54 }
  0x8d   :  { %vm77_vm2 = vcmp.eq.s32.totalorder %v52_v17, %v55_v19  ;;  %vm79_vm3 = vcmp.eq.s32.totalorder %v52_v17, %v61_v18 }
  0x8e   :  { %v704_v21 = vsel %vm77_vm2, 1.0, %v896_v20  ;;  %v706_v24 = vsel %vm79_vm3, 1.0, %v896_v20 }
  0x8f   :  { %800 = vmatprep.mubr.msk.f32.mxu0 %vm108_vm1, %v704_v21 }
  0x90   :  { %v64_v22 = vpop.permute.xlu1 %63  ;;  %v58_v23 = vpop.permute.xlu0 %57 }
  0x91   :  { %vm78_vm4 = vcmp.eq.s32.totalorder %v52_v17, %v58_v23  ;;  %vm80_vm5 = vcmp.eq.s32.totalorder %v52_v17, %v64_v22 }
  0x92   :  { %v705_v25 = vsel %vm78_vm4, 1.0, %v896_v20  ;;  %v707_v28 = vsel %vm80_vm5, 1.0, %v896_v20 }
  0x93   :  { %801 = vmatmul.mubr.msk.f32.vlgmr.msra.gmra.mxu0 %vm108_vm1, %v705_v25 }
  0x94   :  { %v70_v26 = vpop.permute.xlu1 %69  ;;  %803 = vmatprep.mubr.msk.f32.mxu0 %vm108_vm1, %v706_v24  ;;  %v67_v27 = vpop.permute.xlu0 %66 }
  0x95   :  { %vm81_vm6 = vcmp.eq.s32.totalorder %v52_v17, %v67_v27  ;;  %vm82_vm7 = vcmp.eq.s32.totalorder %v52_v17, %v70_v26 }
  0x96   :  { %v708_v29 = vsel %vm81_vm6, 1.0, %v896_v20  ;;  %v709_v32 = vsel %vm82_vm7, 1.0, %v896_v20 }
  0x97   :  { %804 = vmatmul.mubr.msk.f32.gmra.mxu0 %vm108_vm1, %v707_v28 }
  0x98   :  { %v76_v30 = vpop.permute.xlu1 %75  ;;  %806 = vmatprep.mubr.msk.f32.mxu0 %vm108_vm1, %v708_v29  ;;  %v73_v31 = vpop.permute.xlu0 %72 }
  0x99   :  { %vm83_vm8 = vcmp.eq.s32.totalorder %v52_v17, %v73_v31  ;;  %vm84_vm9 = vcmp.eq.s32.totalorder %v52_v17, %v76_v30  ;;  %v587_v30 = vld [vmem:[%s1106_s4] sm:$0xff]  ;;  %s743_s4 = sld [smem:[#allocation4 + $0x1]] }
  0x9a   :  { %v710_v33 = vsel %vm83_vm8, 1.0, %v896_v20  ;;  %v711_v34 = vsel %vm84_vm9, 1.0, %v896_v20  ;;  %vm588_vm11 = vcmp.ne.f32.partialorder %v587_v30, 0.0 }
  0x9b   :  { %807 = vmatmul.mubr.msk.f32.gmra.mxu0 %vm108_vm1, %v709_v32 }
  0x9c   :  { %809 = vmatprep.mubr.msk.f32.mxu0 %vm108_vm1, %v710_v33  ;;  %v1080_v35 = vpop.permute.xlu0 %655 }
  0x9d   :  { %vm658_vm13 = vcmp.eq.f32.partialorder %v1029_v40, %v1080_v35 }
  0x9f   :  { %810 = vmatmul.mubr.msk.f32.gmra.mxu0 %vm108_vm1, %v711_v34 }
 0x153   :  { %v802_v41 = vpop.f32.mrf.mxu0 }
 0x154   :  { %244 = vst.msk [vmem:[#allocation2 + $0x8] sm:$0xff] %vm242_vm10, %v802_v41 }
 0x155   :  { %v203_v42 = vpop.f32.mrf.mxu0 }
 0x156   :  { %243 = vst.msk [vmem:[#allocation2] sm:$0xff] %vm242_vm10, %v203_v42  ;;  %v661_v42 = vsub.f32 %v1029_v40, %v1080_v35 }
 0x157   :  { %v805_v43 = vpop.f32.mrf.mxu0 }
 0x158   :  { %246 = vst.msk [vmem:[#allocation2 + $0x18] sm:$0xff] %vm242_vm10, %v805_v43 }
 0x159   :  { %v213_v44 = vpop.f32.mrf.mxu0 }
 0x15a   :  { %245 = vst.msk [vmem:[#allocation2 + $0x10] sm:$0xff] %vm242_vm10, %v213_v44 }
 0x15b   :  { %v808_v45 = vpop.f32.mrf.mxu0 }
 0x15c   :  { %248 = vst.msk [vmem:[#allocation2 + $0x28] sm:$0xff] %vm242_vm10, %v808_v45 }
 0x15d   :  { %v223_v46 = vpop.f32.mrf.mxu0  ;;  %v259_v47 = vld [vmem:[#allocation2 + $0x1] sm:$0xff] }
 0x15e   :  { %247 = vst.msk [vmem:[#allocation2 + $0x20] sm:$0xff] %vm242_vm10, %v223_v46  ;;  %820 = vmatprep.mubr.msk.f32.mxu1 %vm242_vm10, %v259_v47  ;;  %v251_v57 = vld [vmem:[#allocation2] sm:$0xff] }
 0x15f   :  { %v811_v48 = vpop.f32.mrf.mxu0  ;;  %v462_v0 = vld [vmem:[#allocation2 + $0x2] sm:$0xff] }
 0x160   :  { %250 = vst.msk [vmem:[#allocation2 + $0x38] sm:$0xff] %vm242_vm10, %v811_v48 }
 0x161   :  { %v233_v49 = vpop.f32.mrf.mxu0  ;;  %v260_v50 = vld [vmem:[#allocation2 + $0x11] sm:$0xff] }
 0x162   :  { %249 = vst.msk [vmem:[#allocation2 + $0x30] sm:$0xff] %vm242_vm10, %v233_v49  ;;  %821 = vmatmul.mubr.msk.f32.vlgmr.msra.gmra.mxu1 %vm242_vm10, %v260_v50  ;;  %v252_v58 = vld [vmem:[#allocation2 + $0x10] sm:$0xff] }
 0x163   :  { %827 = vmatpush3.msra.mxu1 %v258_v39  ;;  %v463_v1 = vld [vmem:[#allocation2 + $0x12] sm:$0xff] }
 0x164   :  { %828 = vmatprep.subr.mxu1 %v257_v51 }
 0x165   :  { %v261_v53 = vld [vmem:[#allocation2 + $0x21] sm:$0xff]  ;;  %829 = vmatpush3.msra.mxu1 %v257_v51 }
 0x166   :  { %823 = vmatprep.mubr.msk.f32.mxu1 %vm242_vm10, %v261_v53  ;;  %830 = vmatprep.subr.mxu1 %v256_v52  ;;  %v253_v60 = vld [vmem:[#allocation2 + $0x20] sm:$0xff] }
 0x167   :  { %831 = vmatpush3.msra.mxu1 %v256_v52  ;;  %v464_v2 = vld [vmem:[#allocation2 + $0x22] sm:$0xff]  ;;  %v662_v52 = vand.u32 2147483647, %v661_v42  ;;  %v689_v42 = vstv %s1109_s7 }
 0x168   :  { %832 = vmatprep.subr.mxu1 %v255_v54 }
 0x169   :  { %v262_v56 = vld [vmem:[#allocation2 + $0x31] sm:$0xff]  ;;  %833 = vmatpush3.msra.mxu1 %v255_v54 }
 0x16a   :  { %824 = vmatmul.mubr.msk.f32.gmra.mxu1 %vm242_vm10, %v262_v56  ;;  %840 = vmatprep.subr.mxu1 %v736_v55  ;;  %v254_v62 = vld [vmem:[#allocation2 + $0x30] sm:$0xff] }
 0x16b   :  { %834 = vmatprep.mubr.msk.f32.mxu1 %vm242_vm10, %v251_v57  ;;  %v465_v3 = vld [vmem:[#allocation2 + $0x32] sm:$0xff] }
 0x16e   :  { %835 = vmatmul.mubr.msk.f32.vlgmr.msra.gmra.mxu1 %vm242_vm10, %v252_v58 }
 0x16f   :  { %841 = vmatpush3.msra.mxu1 %v736_v55  ;;  %837 = vmatprep.mubr.msk.f32.mxu1 %vm242_vm10, %v253_v60 }
 0x170   :  { %842 = vmatprep.subr.mxu1 %v735_v59 }
 0x171   :  { %843 = vmatpush3.msra.mxu1 %v735_v59 }
 0x172   :  { %844 = vmatprep.subr.mxu1 %v734_v61  ;;  %838 = vmatmul.mubr.msk.f32.gmra.mxu1 %vm242_vm10, %v254_v62 }
 0x173   :  { %845 = vmatpush3.msra.mxu1 %v734_v61  ;;  %848 = vmatprep.mubr.msk.f32.mxu1 %vm242_vm10, %v462_v0  ;;  %v663_v61 = vadd.f32 1.0, %v662_v52 }
 0x174   :  { %846 = vmatprep.subr.mxu1 %v733_v63 }
 0x175   :  { %847 = vmatpush3.msra.mxu1 %v733_v63 }
 0x176   :  { %849 = vmatmul.mubr.msk.f32.vlgmr.msra.gmra.mxu1 %vm242_vm10, %v463_v1 }
 0x177   :  { %851 = vmatprep.mubr.msk.f32.mxu1 %vm242_vm10, %v464_v2 }
 0x17a   :  { %852 = vmatmul.mubr.msk.f32.gmra.mxu1 %vm242_vm10, %v465_v3 }
 0x222   :  { %v822_v4 = vpop.f32.mrf.mxu1 }
 0x224   :  { %v346_v5 = vpop.f32.mrf.mxu1 }
 0x22a   :  { %v825_v6 = vpop.f32.mrf.mxu1 }
 0x22c   :  { %v356_v7 = vpop.f32.mrf.mxu1 }
 0x22e   :  { %v836_v8 = vpop.f32.mrf.mxu1 }
 0x22f   :  { %v449_v12 = vadd.f32 %v836_v8, %v822_v4 }
 0x230   :  { %v443_v9 = vpop.f32.mrf.mxu1 }
 0x231   :  { %v444_v15 = vadd.f32 %v443_v9, %v346_v5 }
 0x232   :  { %v839_v10 = vpop.f32.mrf.mxu1 }
 0x233   :  { %v459_v18 = vadd.f32 %v839_v10, %v825_v6 }
 0x234   :  { %v453_v11 = vpop.f32.mrf.mxu1 }
 0x235   :  { %v454_v23 = vadd.f32 %v453_v11, %v356_v7 }
 0x236   :  { %v850_v13 = vpop.f32.mrf.mxu1 }
 0x237   :  { %v569_v16 = vadd.f32 %v850_v13, %v449_v12 }
 0x238   :  { %v549_v17 = vpop.f32.mrf.mxu1 }
 0x239   :  { %v580_v19 = vadd.f32 %v741_v14, %v569_v16  ;;  %v568_v21 = vadd.f32 %v549_v17, %v444_v15  ;;  %v669_v17 = vstv %s743_s4 }
 0x23a   :  { %v853_v22 = vpop.f32.mrf.mxu1 }
 0x23b   :  { %862 = vtanh.f32 %v580_v19  ;;  %v579_v24 = vadd.f32 %v741_v14, %v568_v21  ;;  %v571_v25 = vadd.f32 %v853_v22, %v459_v18  ;;  %v677_v19 = vstv %s744_s17 }
 0x23c   :  { %v559_v26 = vpop.f32.mrf.mxu1 }
 0x23d   :  { %864 = vtanh.f32 %v579_v24  ;;  %v582_v27 = vadd.f32 %v741_v14, %v571_v25  ;;  %v570_v28 = vadd.f32 %v559_v26, %v454_v23 }
 0x23f   :  { %866 = vtanh.f32 %v582_v27  ;;  %v581_v29 = vadd.f32 %v741_v14, %v570_v28  ;;  %v742_v28 = vsel %vm658_vm13, 1.0, %v896_v20 }
 0x241   :  { %868 = vtanh.f32 %v581_v29  ;;  %v666_v29 = vstv %s665_s20 }
 0x242   :  { %870 = vrcp.f32 %v663_v61 }
 0x248   :  { %v863_v31 = vpop.eup %862 }
 0x249   :  { %v592_v32 = vsel %vm588_vm11, %v863_v31, -1.0  ;;  %v667_v31 = vmul.f32 %v742_v28, %v666_v29 }
 0x24a   :  { %v865_v33 = vpop.eup %864  ;;  %v601_v34 = vrot.slane %v592_v32, 4 }
 0x24b   :  { %v591_v36 = vsel %vm588_vm11, %v865_v33, -1.0 }
 0x24c   :  { %v867_v37 = vpop.eup %866  ;;  %v595_v38 = vrot.slane %v591_v36, 4  ;;  %v602_v39 = vmax.f32 %v592_v32, %v601_v34  ;;  %v685_v34 = vstv %s745_s21 }
 0x24d   :  { %v594_v41 = vsel %vm588_vm11, %v867_v37, -1.0 }
 0x24e   :  { %v869_v43 = vpop.eup %868  ;;  %v596_v44 = vmax.f32 %v591_v36, %v595_v38  ;;  %v603_v45 = vrot.slane %v602_v39, 2  ;;  %v613_v46 = vrot.slane %v594_v41, 4 }
 0x24f   :  { %v593_v47 = vsel %vm588_vm11, %v869_v43, -1.0  ;;  %v871_v16 = vpop.eup %870 }
 0x250   :  { %v597_v48 = vrot.slane %v596_v44, 2  ;;  %v604_v49 = vmax.f32 %v602_v39, %v603_v45  ;;  %v607_v50 = vrot.slane %v593_v47, 4  ;;  %v614_v51 = vmax.f32 %v594_v41, %v613_v46 }
 0x251   :  { %v670_v18 = vmul.f32 %v871_v16, %v669_v17  ;;  %v678_v21 = vmul.f32 %v871_v16, %v677_v19 }
 0x252   :  { %v598_v53 = vmax.f32 %v596_v44, %v597_v48  ;;  %v605_v54 = vrot.slane %v604_v49, 1  ;;  %v608_v55 = vmax.f32 %v593_v47, %v607_v50  ;;  %v615_v56 = vrot.slane %v614_v51, 2 }
 0x254   :  { %v599_v57 = vrot.slane %v598_v53, 1  ;;  %v606_v58 = vmax.f32 %v604_v49, %v605_v54  ;;  %v609_v59 = vrot.slane %v608_v55, 2  ;;  %v616_v60 = vmax.f32 %v614_v51, %v615_v56 }
 0x256   :  { %v600_v62 = vmax.f32 %v598_v53, %v599_v57  ;;  %v610_v63 = vmax.f32 %v608_v55, %v609_v59  ;;  %v617_v0 = vrot.slane %v616_v60, 1  ;;  %v630_v2 = vmul.f32 %v606_v58, %v606_v58 }
 0x258   :  { %v629_v1 = vmul.f32 %v600_v62, %v600_v62  ;;  %v611_v3 = vrot.slane %v610_v63, 1  ;;  %v618_v4 = vmax.f32 %v616_v60, %v617_v0 }
 0x25a   :  { %v633_v5 = vsel %vm623_vm12, %v630_v2, %v629_v1  ;;  %v612_v6 = vmax.f32 %v610_v63, %v611_v3  ;;  %v639_v9 = vmul.f32 %v618_v4, %v618_v4  ;;  %v620_v12 = vmul.f32 %v618_v4, %v606_v58 }
 0x25b   :  { %v635_v7 = vsel %vm133_vm0, %v633_v5, 0.0 }
 0x25c   :  { %636 = vadd.xlane.f32.xlu1 %v635_v7  ;;  %v638_v8 = vmul.f32 %v612_v6, %v612_v6  ;;  %v619_v10 = vmul.f32 %v612_v6, %v600_v62 }
 0x25e   :  { %v642_v11 = vsel %vm623_vm12, %v639_v9, %v638_v8  ;;  %v624_v14 = vsel %vm623_vm12, %v620_v12, %v619_v10 }
 0x25f   :  { %v644_v13 = vsel %vm133_vm0, %v642_v11, 0.0  ;;  %v626_v15 = vsel %vm133_vm0, %v624_v14, 0.0 }
 0x260   :  { %645 = vadd.xlane.f32.xlu0 %v644_v13 }
 0x264   :  { %627 = vadd.xlane.f32.xlu0 %v626_v15 }
 0x26d   :  { %672 = vrot.lane.b32.xlu1 %v670_v18, %s898_s18 }
 0x27a   :  { %680 = vrot.lane.b32.xlu0 %v678_v21, %s899_s19 }
 0x2e5   :  { %v637_v22 = vpop.xlane.xlu1 %636 }
 0x2e6   :  { %v647_v23 = vmax.f32 %v637_v22, 1e-16 }
 0x2e8   :  { %872 = vrsqrt.f32 %v647_v23 }
 0x2e9   :  { %v646_v24 = vpop.xlane.xlu0 %645  ;;  %v673_v30 = vpop.permute.xlu1 %672 }
 0x2ea   :  { %v650_v25 = vmax.f32 %v646_v24, 1e-16  ;;  %v675_v37 = vadd.f32 %v673_v30, %v667_v31 }
 0x2ec   :  { %874 = vrsqrt.f32 %v650_v25 }
 0x2ed   :  { %v628_v26 = vpop.xlane.xlu0 %627 }
 0x2f1   :  { %v681_v36 = vpop.permute.xlu0 %680 }
 0x2f2   :  { %v683_v41 = vadd.f32 %v681_v36, %v675_v37 }
 0x2f5   :  { %v873_v27 = vpop.eup %872 }
 0x2f6   :  { %v649_v32 = vmul.f32 %v873_v27, %v628_v26 }
 0x2f9   :  { %v875_v33 = vpop.eup %874 }
 0x2fa   :  { %v652_v38 = vmul.f32 %v875_v33, %v649_v32 }
 0x2fc   :  { %v686_v39 = vmul.f32 %v685_v34, %v652_v38 }
 0x2fe   :  { %v687_v40 = vadd.f32 %v686_v39, %v683_v41 }
 0x300   :  { %v690_v35 = vadd.f32 %v689_v42, %v687_v40 }
 0x302   :  { %v746_v43 = vmul.f32 -1.442695, %v690_v35 }
 0x304   :  { %876 = vpow2.f32 %v746_v43 }
 0x311   :  { %v877_v20 = vpop.eup %876 }
 0x312   :  { %v694_v44 = vadd.f32 1.0, %v877_v20 }
 0x314   :  { %878 = vrcp.f32 %v694_v44 }
 0x321   :  { %v879_v45 = vpop.eup %878 }
 0x322   :  { %698 = vst.msk [vmem:[%s1110_s8] sm:$0x3] %vm697_vm14, %v879_v45 }
 0x323   :  { %703 = vsyncpa [#allocation5], 1 }

</bundles_post_ra>
